<compile_context>
chip_gen: v7x
topology: tpu7x:2x2x1
jax: 0.10.0
libtpu: 0.0.40
codegen_flags: <defaults>
</compile_context>

<pallas_src>
import jax
import jax.numpy as jnp
from jax.experimental import pallas as pl
from jax.experimental.pallas import tpu as pltpu


def rnn_cell_kernel(x_ref, h_ref, wx_ref, wh_ref, b_ref, o_ref):
    # Two small MXU matmuls with f32 accumulation (both K dims pad to a single
    # 128-wide MXU pass anyway, so splitting them costs nothing), one VPU
    # broadcast-add for the bias, tanh on the EUP in f32.
    acc = jnp.dot(x_ref[...], wx_ref[...], preferred_element_type=jnp.float32)
    acc = acc + jnp.dot(h_ref[...], wh_ref[...], preferred_element_type=jnp.float32)
    acc = acc + b_ref[...]            # (1, hidden) broadcasts over batch rows
    o_ref[...] = jnp.tanh(acc).astype(o_ref.dtype)


def rnn_cell(x, h_1, Wx, Wh, b):
    B, in_dim = x.shape
    hidden = Wx.shape[1]
    assert h_1.shape == (B, hidden)
    assert Wh.shape == (hidden, hidden)
    assert b.shape == (1, hidden)

    itemsize = jnp.dtype(x.dtype).itemsize
    cost = pl.CostEstimate(
        flops=2 * B * (in_dim + hidden) * hidden + B * hidden,
        transcendentals=B * hidden,
        bytes_accessed=itemsize * (B * in_dim + B * hidden + in_dim * hidden
                                   + hidden * hidden + hidden + B * hidden),
    )

    vmem_spec = pl.BlockSpec(memory_space=pltpu.MemorySpace.VMEM)
    return pl.pallas_call(
        rnn_cell_kernel,
        out_shape=jax.ShapeDtypeStruct((B, hidden), x.dtype),
        in_specs=[vmem_spec] * 5,
        out_specs=vmem_spec,
        cost_estimate=cost,
    )(x, h_1, Wx, Wh, b)


if __name__ == "__main__":
    B, in_dim, hidden = 8, 16, 32

    key = jax.random.PRNGKey(0)
    k_x, k_h, k_wx, k_wh, k_b = jax.random.split(key, 5)

    # torch.rand -> uniform [0, 1)
    x   = jax.random.uniform(k_x,  (B, in_dim),      dtype=jnp.float32)
    h_1 = jax.random.uniform(k_h,  (B, hidden),      dtype=jnp.float32)
    Wx  = jax.random.uniform(k_wx, (in_dim, hidden), dtype=jnp.float32)
    Wh  = jax.random.uniform(k_wh, (hidden, hidden), dtype=jnp.float32)
    b   = jax.random.uniform(k_b,  (1, hidden),      dtype=jnp.float32)

    h = jax.jit(rnn_cell)(x, h_1, Wx, Wh, b)
    jax.block_until_ready(h)

    # Reference check in plain JAX.
    h_ref = jnp.tanh(x @ Wx + h_1 @ Wh + b)
    assert h.shape == (B, hidden)
    assert jnp.allclose(h, h_ref, atol=1e-5, rtol=1e-5)

    print("KERNEL_OK")
</pallas_src>

<mosaic_0001>
module attributes {stable_mosaic.version = 11 : i64} {
  func.func @rnn_cell_kernel(%arg0: memref<8x16xf32, #tpu.memory_space<vmem>>, %arg1: memref<8x32xf32, #tpu.memory_space<vmem>>, %arg2: memref<16x32xf32, #tpu.memory_space<vmem>>, %arg3: memref<32x32xf32, #tpu.memory_space<vmem>>, %arg4: memref<1x32xf32, #tpu.memory_space<vmem>>, %arg5: memref<8x32xf32, #tpu.memory_space<vmem>>) attributes {dimension_semantics = [], scalar_prefetch = 0 : i64, scratch_operands = 0 : i64, tpu.core_type = #tpu.core_type<tc>} {
    %c0 = arith.constant 0 : index
    %c0_0 = arith.constant 0 : index
    %0 = vector.load %arg0[%c0, %c0_0] : memref<8x16xf32, #tpu.memory_space<vmem>>, vector<8x16xf32>
    %c0_1 = arith.constant 0 : index
    %c0_2 = arith.constant 0 : index
    %1 = vector.load %arg2[%c0_1, %c0_2] : memref<16x32xf32, #tpu.memory_space<vmem>>, vector<16x32xf32>
    %cst = arith.constant dense<0.000000e+00> : vector<8x32xf32>
    %2 = tpu.matmul %0, %1, %cst {dimension_numbers = #tpu.dot_dimension_numbers<[1], [0], [0], [1], [0, 0, 1, 1], [], []>} : vector<8x16xf32>, vector<16x32xf32>, vector<8x32xf32> -> vector<8x32xf32>
    %c0_3 = arith.constant 0 : index
    %c0_4 = arith.constant 0 : index
    %3 = vector.load %arg1[%c0_3, %c0_4] : memref<8x32xf32, #tpu.memory_space<vmem>>, vector<8x32xf32>
    %c0_5 = arith.constant 0 : index
    %c0_6 = arith.constant 0 : index
    %4 = vector.load %arg3[%c0_5, %c0_6] : memref<32x32xf32, #tpu.memory_space<vmem>>, vector<32x32xf32>
    %cst_7 = arith.constant dense<0.000000e+00> : vector<8x32xf32>
    %5 = tpu.matmul %3, %4, %cst_7 {dimension_numbers = #tpu.dot_dimension_numbers<[1], [0], [0], [1], [0, 0, 1, 1], [], []>} : vector<8x32xf32>, vector<32x32xf32>, vector<8x32xf32> -> vector<8x32xf32>
    %6 = arith.addf %2, %5 : vector<8x32xf32>
    %c0_8 = arith.constant 0 : index
    %c0_9 = arith.constant 0 : index
    %7 = vector.load %arg4[%c0_8, %c0_9] : memref<1x32xf32, #tpu.memory_space<vmem>>, vector<1x32xf32>
    %8 = vector.broadcast %7 : vector<1x32xf32> to vector<8x32xf32>
    %9 = arith.addf %6, %8 : vector<8x32xf32>
    %10 = math.tanh %9 : vector<8x32xf32>
    %c0_10 = arith.constant 0 : index
    %c0_11 = arith.constant 0 : index
    %11 = vector.load %arg5[%c0_10, %c0_11] : memref<8x32xf32, #tpu.memory_space<vmem>>, vector<8x32xf32>
    tpu.vector_store %arg5[%c0_10, %c0_11], %10 {strides = array<i32>} : memref<8x32xf32, #tpu.memory_space<vmem>>, vector<8x32xf32>,
    return
  }
}

</mosaic_0001>

<bundles_post_ra>
// kernel: rnn_cell.1
= control target key start
LH: loop header
LB: loop body
LE: loop exit
PB: predicated region body
PF: predicated region fallthrough
CT: control target
= control target key end

     0   :  { %10 = vsyncpa [#allocation3], 0  ;;  %s526_s0 = inlined_call_operand.hbm [shape: f32[8,16], index: 0, kind: input, shape index: {}]   ;;  %s527_s1 = inlined_call_operand.hbm [shape: f32[8,32], index: 1, kind: input, shape index: {}]   ;;  %s528_s2 = inlined_call_operand.hbm [shape: f32[16,32], index: 2, kind: input, shape index: {}]   ;;  %s529_s3 = inlined_call_operand.hbm [shape: f32[32,32], index: 3, kind: input, shape index: {}]   ;;  %s530_s4 = inlined_call_operand.vmem [shape: f32[1,32], index: 4, kind: input, shape index: {}]   ;;  %s531_s5 = inlined_call_operand.hbm [shape: f32[8,32], index: 5, kind: output, shape index: {}]  }
   0x1   :  { %11 = vsyncpa [#allocation6], 0 }
   0x2   :  { %12 = vsyncpa [#allocation9], 0 }
   0x3   :  { %13 = vsyncpa [#allocation4], 0  ;;  %s423_s18 = smov [#allocation5]   ;;  %s424_s20 = smov [#allocation2]  }
   0x4   :  { %s30_s19 = sshll.u32 %s423_s18, 4  ;;  %s20_s21 = sshll.u32 %s424_s20, 4  ;;  %s31_s19 = int_to_ptr.vmem [resolvable:$true] %s30_s19  ;;  %s21_s21 = int_to_ptr.vmem [resolvable:$true] %s20_s21 }
   0x5   :  { %s305_s24 = scalar_lea.hbm %s527_s1, 128 }
   0x6   :  { %p306_p0 = scmp.ne.s32.totalorder %s527_s1, %s305_s24  ;;  %p309_p1 = scmp.lt.u32.totalorder %s305_s24, %s527_s1 }
   0x8   :  { %p311_p2 = pnand %p309_p1, %p306_p0 }
   0xa   :  { %314 = shalt.err (!%p311_p2)
}
   0xb   :  { %s315_s29 = scalar_lea.vmem %s31_s19, 128  ;;  %p320_p4 = scmp.lt.s32.totalorder %s31_s19, %s31_s19 }
   0xc   :  { %p316_p3 = scmp.ne.s32.totalorder %s31_s19, %s315_s29  ;;  %p321_p5 = scmp.lt.s32.totalorder %s315_s29, %s315_s29 }
   0xe   :  { %p322_p6 = por %p321_p5, %p320_p4 }
  0x10   :  { %p323_p7 = pnand %p322_p6, %p316_p3 }
  0x12   :  { %326 = shalt.err (!%p323_p7)
}
  0x13   :  { %33 = dma.hbm_to_vmem [thread:$0]  %s527_s1, 128, %s31_s19, [#allocation6]  }
  0x14   :  { %s327_s9 = scalar_lea.hbm %s526_s0, 128 }
  0x15   :  { %p328_p8 = scmp.ne.s32.totalorder %s526_s0, %s327_s9  ;;  %p331_p9 = scmp.lt.u32.totalorder %s327_s9, %s526_s0 }
  0x17   :  { %p333_p10 = pnand %p331_p9, %p328_p8 }
  0x19   :  { %336 = shalt.err (!%p333_p10)
}
  0x1a   :  { %s337_s14 = scalar_lea.vmem %s21_s21, 128  ;;  %p342_p12 = scmp.lt.s32.totalorder %s21_s21, %s21_s21 }
  0x1b   :  { %p338_p11 = scmp.ne.s32.totalorder %s21_s21, %s337_s14  ;;  %p343_p13 = scmp.lt.s32.totalorder %s337_s14, %s337_s14 }
  0x1d   :  { %p344_p0 = por %p343_p13, %p342_p12 }
  0x1f   :  { %p345_p1 = pnand %p344_p0, %p338_p11 }
  0x21   :  { %348 = shalt.err (!%p345_p1)
}
  0x22   :  { %23 = dma.hbm_to_vmem [thread:$0]  %s526_s0, 128, %s21_s21, [#allocation3]  }
  0x23   :  { %s425_s16 = smov [#allocation7]   ;;  %s349_s20 = scalar_lea.hbm %s528_s2, 256 }
  0x24   :  { %s39_s17 = sshll.u32 %s425_s16, 4  ;;  %p350_p2 = scmp.ne.s32.totalorder %s528_s2, %s349_s20  ;;  %s40_s17 = int_to_ptr.vmem [resolvable:$true] %s39_s17 }
  0x25   :  { %p353_p3 = scmp.lt.u32.totalorder %s349_s20, %s528_s2 }
  0x27   :  { %p355_p4 = pnand %p353_p3, %p350_p2 }
  0x29   :  { %358 = shalt.err (!%p355_p4)
}
  0x2a   :  { %s359_s26 = scalar_lea.vmem %s40_s17, 256  ;;  %p364_p6 = scmp.lt.s32.totalorder %s40_s17, %s40_s17 }
  0x2b   :  { %p360_p5 = scmp.ne.s32.totalorder %s40_s17, %s359_s26  ;;  %p365_p7 = scmp.lt.s32.totalorder %s359_s26, %s359_s26 }
  0x2d   :  { %p366_p8 = por %p365_p7, %p364_p6 }
  0x2f   :  { %p367_p9 = pnand %p366_p8, %p360_p5 }
  0x31   :  { %370 = shalt.err (!%p367_p9)
}
  0x32   :  { %s426_s0 = smov 128   ;;  %s427_s21 = smov 8  }
  0x33   :  { %45 = dma.hbm_to_vmem [thread:$0]  %s528_s2, 256, %s40_s17, [#allocation6], %s426_s0, %s426_s0, %s427_s21  }
  0x34   :  { %s428_s29 = smov [#allocation8]   ;;  %s371_s8 = scalar_lea.hbm %s529_s3, 512 }
  0x35   :  { %s51_s30 = sshll.u32 %s428_s29, 4  ;;  %p372_p10 = scmp.ne.s32.totalorder %s529_s3, %s371_s8  ;;  %s52_s30 = int_to_ptr.vmem [resolvable:$true] %s51_s30 }
  0x36   :  { %p375_p11 = scmp.lt.u32.totalorder %s371_s8, %s529_s3 }
  0x38   :  { %p377_p12 = pnand %p375_p11, %p372_p10 }
  0x3a   :  { %380 = shalt.err (!%p377_p12)
}
  0x3b   :  { %s381_s13 = scalar_lea.vmem %s52_s30, 512  ;;  %p386_p0 = scmp.lt.s32.totalorder %s52_s30, %s52_s30 }
  0x3c   :  { %p382_p13 = scmp.ne.s32.totalorder %s52_s30, %s381_s13  ;;  %p387_p1 = scmp.lt.s32.totalorder %s381_s13, %s381_s13 }
  0x3e   :  { %p388_p2 = por %p387_p1, %p386_p0 }
  0x40   :  { %p389_p3 = pnand %p388_p2, %p382_p13 }
  0x42   :  { %392 = shalt.err (!%p389_p3)
}
  0x43   :  { %57 = dma.hbm_to_vmem [thread:$0]  %s529_s3, 512, %s52_s30, [#allocation9], %s426_s0, %s426_s0, %s427_s21  }
  0x44   :  { %415 = dma.done.wait [#allocation3], 128  }
  0x45   :  { %416 = vsyncadd [#allocation3], 4294967168 }
  0x46   :  { %417 = dma.done.wait [#allocation6], 384  }
  0x47   :  { %418 = vsyncadd [#allocation6], 4294966912 }
  0x48   :  { %419 = dma.done.wait [#allocation9], 512  }
  0x49   :  { %420 = vsyncadd [#allocation9], 4294966784  ;;  %v429_v0 = vmov 0.0|0.0   ;;  %vm430_vm0 = vmmov 0   ;;  %v431_v1 = vmov 0.0   ;;  %v76_v2 = vld [vmem:[#allocation8] sm:$0xff] }
  0x4a   :  { %284 = vmatprep.subr.bf16.mxu0 %v429_v0  ;;  %290 = vmatprep.subr.bf16.mxu1 %v429_v0  ;;  %v77_v3 = vld [vmem:[#allocation8 + $0x8] sm:$0xff]  ;;  %v73_v4 = vld [vmem:[#allocation7] sm:$0xff]  ;;  %v74_v6 = vld [vmem:[#allocation7 + $0x8] sm:$0xff]  ;;  %vm154_vm1 = vcmask 130048   ;;  %vm80_vm2 = vcmask 261120   ;;  %s432_s15 = smov [#allocation10]  }
  0x4b   :  { %281 = vmatprep.mubr.msk.f32.mxu1 %vm430_vm0, %v431_v1  ;;  %274 = vmatprep.mubr.msk.f32.mxu0 %vm430_vm0, %v431_v1  ;;  %v285_v5 = vpack.c.bf16 %v77_v3, %v76_v2  ;;  %v78_v7 = vld [vmem:[#allocation8 + $0x10] sm:$0xff]  ;;  %v79_v8 = vld [vmem:[#allocation8 + $0x18] sm:$0xff]  ;;  %v291_v9 = vpack.c.bf16 %v74_v6, %v73_v4  ;;  %v72_v11 = vld [vmem:[#allocation2] sm:$0xff]  ;;  %s244_s16 = sshll.u32 %s432_s15, 4  ;;  %s245_s16 = int_to_ptr.vmem [resolvable:$true] %s244_s16 }
  0x4c   :  { %v288_v10 = vpack.c.bf16 %v79_v8, %v78_v7  ;;  %v75_v12 = vld [vmem:[#allocation5] sm:$0xff]  ;;  %v257_v16 = vld [vmem:[%s530_s4] ss:$0 sm:$0xff]  ;;  %s393_s17 = scalar_lea.vmem %s245_s16, 128  ;;  %p398_p5 = scmp.lt.s32.totalorder %s245_s16, %s245_s16 }
  0x4d   :  { %286 = vmatpush3.bf16.msra.mxu0 %v285_v5  ;;  %292 = vmatpush3.bf16.msra.mxu1 %v291_v9  ;;  %p394_p4 = scmp.ne.s32.totalorder %s245_s16, %s393_s17  ;;  %p399_p6 = scmp.lt.s32.totalorder %s393_s17, %s393_s17 }
  0x4e   :  { %287 = vmatprep.subr.bf16.mxu0 %v429_v0 }
  0x4f   :  { %p400_p7 = por %p399_p6, %p398_p5 }
  0x50   :  { %282 = vmatmul.mubr.msk.f32.vlgmr.msra.gmra.mrb[0].mxu1 %vm154_vm1, %v72_v11 }
  0x51   :  { %289 = vmatpush3.bf16.msra.mxu0 %v288_v10  ;;  %p401_p8 = pnand %p400_p7, %p394_p4 }
  0x54   :  { %275 = vmatmul.mubr.msk.f32.vlgmr.msra.gmra.mrb[0].mxu0 %vm80_vm2, %v75_v12 }
 0x123   :  { %v224_v13 = vpop.f32.mrb[0].mxu1 }
 0x124   :  { %v283_v14 = vpop.f32.mrb[1].mxu1 }
 0x127   :  { %v150_v15 = vpop.f32.mrb[0].mxu0 }
 0x128   :  { %v225_v17 = vadd.f32 %v224_v13, %v150_v15  ;;  %v276_v18 = vpop.f32.mrb[1].mxu0 }
 0x12a   :  { %v235_v19 = vadd.f32 %v257_v16, %v225_v17 }
 0x12c   :  { %303 = vtanh.f32 %v235_v19 }
 0x136   :  { %v304_v20 = vpop.eup %303 }
 0x137   :  { %237 = vst.msk [vmem:[#allocation10] sm:$0xff] %vm80_vm2, %v304_v20 }
 0x138   :  { %404 = shalt.err (!%p401_p8)
}
 0x139   :  { %s405_s4 = scalar_lea.hbm %s531_s5, 128 }
 0x13a   :  { %p406_p9 = scmp.ne.s32.totalorder %s531_s5, %s405_s4  ;;  %p409_p10 = scmp.lt.u32.totalorder %s405_s4, %s531_s5 }
 0x13c   :  { %p411_p11 = pnand %p409_p10, %p406_p9 }
 0x13e   :  { %414 = shalt.err (!%p411_p11)
}
 0x13f   :  { %247 = dma.vmem_to_hbm [thread:$0]  %s245_s16, 128, %s531_s5, [#allocation4]  }
 0x140   :  { %421 = dma.done.wait [#allocation4], 128  }
 0x141   :  { %422 = vsyncadd [#allocation4], 4294967168 }
 0x142   :  { %251 = vsyncpa [#allocation3], 1 }
 0x143   :  { %252 = vsyncpa [#allocation6], 1 }
 0x144   :  { %253 = vsyncpa [#allocation9], 1 }
 0x145   :  { %254 = vsyncpa [#allocation4], 1 }

</bundles_post_ra>
